<compile_context>
chip_gen: v7x
topology: tpu7x:2x2x1
jax: 0.10.0
libtpu: 0.0.40
codegen_flags: <defaults>
</compile_context>

<pallas_src>
import functools

import jax
import jax.numpy as jnp
from jax.experimental import pallas as pl
from jax.experimental.pallas import tpu as pltpu


def _round_up(n, m):
    return ((n + m - 1) // m) * m


def qnet_kernel(x_ref, a_ref, w1x_ref, w1a_ref, b1_ref, w2_ref, b2_ref,
                w3r_ref, b3_ref, o_ref):
    # MXU operand dtype follows the weight dtype (f32 or bf16); accumulation,
    # bias-add and ReLU stay in f32.
    cdt = w2_ref.dtype

    # fc1 (split over [x | a] input features -> no lane concat) + ReLU.
    h1 = (jnp.dot(x_ref[...], w1x_ref[...], preferred_element_type=jnp.float32)
          + jnp.dot(a_ref[...], w1a_ref[...], preferred_element_type=jnp.float32)
          + b1_ref[...])
    h1 = jnp.maximum(h1, 0.0)

    # fc2 + ReLU.
    h2 = jnp.dot(h1.astype(cdt), w2_ref[...],
                 preferred_element_type=jnp.float32) + b2_ref[...]
    h2 = jnp.maximum(h2, 0.0)

    # fc3 as a lane-dense row: (1, hidden) @ (bm, hidden)^T -> (1, bm).
    q = jnp.dot(w3r_ref[...], h2.astype(cdt).T,
                preferred_element_type=jnp.float32)
    o_ref[...] = q + b3_ref[0, 0]          # b3 scalar from SMEM


@functools.partial(jax.jit, static_argnames=("bm", "use_bf16"))
def qnetwork_forward(x, a, params, *, bm=None, use_bf16=True):
    """x: [B, obs_dim] f32, a: [B, act_dim] f32 -> q: [B, 1] f32."""
    w1, b1, w2, b2, w3, b3 = params
    B, obs_dim = x.shape
    _, act_dim = a.shape
    hidden = w1.shape[1]

    # Batch-tile selection:
    #   B <= 128        : one tile spanning the whole batch (block == full dim,
    #                     so any B is legal without padding).
    #   128 < B <= 512  : >= 2 tiles, multiple of 128 (both v7x TCs get work).
    #   512 < B <= 4096 : >= 2 tiles, multiple of 256 (exact v6e/v7x MXU tiles).
    #   B > 4096        : bm = 1024 (amortizes the ~0.35 us per-step overhead).
    if bm is None:
        if B <= 128:
            bm = B
        elif B <= 512:
            bm = _round_up(pl.cdiv(B, 2), 128)
        elif B <= 4096:
            bm = _round_up(pl.cdiv(B, 2), 256)
        else:
            bm = 1024
    grid = (pl.cdiv(B, bm),)   # no pad: ragged last block is masked by Pallas

    # Split fc1 weights along the input axis (obs part / action part) so the
    # kernel never concatenates along lanes.  fc3 weight as a lane row.
    w1x = w1[:obs_dim, :]
    w1a = w1[obs_dim:, :]
    w3_row = w3.reshape(1, hidden)
    w2m = w2

    if use_bf16:
        # Cast MXU operands (and the streamed inputs) in the wrapper: halves
        # the per-tile input DMA bytes and removes in-kernel casts.
        x = x.astype(jnp.bfloat16)
        a = a.astype(jnp.bfloat16)
        w1x = w1x.astype(jnp.bfloat16)
        w1a = w1a.astype(jnp.bfloat16)
        w2m = w2m.astype(jnp.bfloat16)
        w3_row = w3_row.astype(jnp.bfloat16)

    full = lambda i: (0, 0)   # weights/biases resident for every batch tile

    out = pl.pallas_call(
        qnet_kernel,
        out_shape=jax.ShapeDtypeStruct((1, B), jnp.float32),   # lane-dense q row
        grid_spec=pltpu.PrefetchScalarGridSpec(
            num_scalar_prefetch=0,
            grid=grid,
            in_specs=[
                pl.BlockSpec((bm, obs_dim), lambda i: (i, 0)),   # x tile
                pl.BlockSpec((bm, act_dim), lambda i: (i, 0)),   # a tile
                pl.BlockSpec((obs_dim, hidden), full),           # W1 (obs rows)
                pl.BlockSpec((act_dim, hidden), full),           # W1 (act rows)
                pl.BlockSpec((1, hidden), full),                 # b1
                pl.BlockSpec((hidden, hidden), full),            # W2
                pl.BlockSpec((1, hidden), full),                 # b2
                pl.BlockSpec((1, hidden), full),                 # W3 row
                pl.BlockSpec(memory_space=pltpu.MemorySpace.SMEM),  # b3 scalar
            ],
            out_specs=pl.BlockSpec((1, bm), lambda i: (0, i)),
        ),
        compiler_params=pltpu.CompilerParams(
            dimension_semantics=("parallel",),
        ),
    )(x, a, w1x, w1a, b1, w2m, b2, w3_row, b3)

    return out.reshape(B, 1)


def init_params(key, obs_dim, act_dim, goal_size=0, hidden=256):
    """Deterministic synthetic init (PyTorch Linear-style uniform fan-in bound)."""
    in_dim = obs_dim + act_dim + goal_size
    ks = jax.random.split(key, 6)

    def linear(kw, kb, fan_in, fan_out):
        bound = 1.0 / jnp.sqrt(fan_in)
        # Stored as [in, out] (transpose of PyTorch's [out, in]).
        w = jax.random.uniform(kw, (fan_in, fan_out), jnp.float32, -bound, bound)
        b = jax.random.uniform(kb, (1, fan_out), jnp.float32, -bound, bound)
        return w, b

    w1, b1 = linear(ks[0], ks[1], in_dim, hidden)
    w2, b2 = linear(ks[2], ks[3], hidden, hidden)
    w3, b3 = linear(ks[4], ks[5], hidden, 1)
    return (w1, b1, w2, b2, w3, b3)


def reference_forward(x, a, params):
    w1, b1, w2, b2, w3, b3 = params
    xa = jnp.concatenate([x, a], axis=1)
    h1 = jnp.maximum(xa @ w1 + b1, 0.0)
    h2 = jnp.maximum(h1 @ w2 + b2, 0.0)
    return h2 @ w3 + b3


if __name__ == "__main__":
    key = jax.random.PRNGKey(0)
    k_x, k_a, k_p, k_x2, k_a2 = jax.random.split(key, 5)

    # Small shapes consistent with the module: obs=16, act=8, goal=0, batch=8.
    B, OBS, ACT = 8, 16, 8
    x = jax.random.normal(k_x, (B, OBS), jnp.float32)
    a = jax.random.normal(k_a, (B, ACT), jnp.float32)
    params = init_params(k_p, OBS, ACT, goal_size=0, hidden=256)
    q_ref = reference_forward(x, a, params)

    # f32 MXU-operand path: tight check against the reference.
    q_f32 = jax.block_until_ready(qnetwork_forward(x, a, params, use_bf16=False))
    assert q_f32.shape == (B, 1)
    assert jnp.allclose(q_f32, q_ref, atol=1e-3, rtol=1e-3), "f32 mismatch vs reference"

    # Default bf16 MXU-operand path: loose check.
    q_bf = jax.block_until_ready(qnetwork_forward(x, a, params))
    assert q_bf.shape == (B, 1)
    assert jnp.allclose(q_bf, q_ref, atol=5e-2, rtol=5e-2), "bf16 mismatch vs reference"

    # Larger batch not divisible by the tile: exercises grid=2 (megacore),
    # the ragged (masked) last block with no wrapper padding, and lane-dense out.
    B2 = 300
    x2 = jax.random.normal(k_x2, (B2, OBS), jnp.float32)
    a2 = jax.random.normal(k_a2, (B2, ACT), jnp.float32)
    q2_ref = reference_forward(x2, a2, params)
    q2_f32 = jax.block_until_ready(qnetwork_forward(x2, a2, params, use_bf16=False))
    assert q2_f32.shape == (B2, 1)
    assert jnp.allclose(q2_f32, q2_ref, atol=1e-3, rtol=1e-3), "tiled f32 mismatch"
    q2_bf = jax.block_until_ready(qnetwork_forward(x2, a2, params))
    assert q2_bf.shape == (B2, 1)
    assert jnp.allclose(q2_bf, q2_ref, atol=5e-2, rtol=5e-2), "tiled bf16 mismatch"

    print("KERNEL_OK")
</pallas_src>

<mosaic_0001>
module attributes {stable_mosaic.version = 11 : i64} {
  func.func @qnet_kernel(%arg0: i32, %arg1: memref<8x16xf32, #tpu.memory_space<vmem>>, %arg2: memref<8x8xf32, #tpu.memory_space<vmem>>, %arg3: memref<16x256xf32, #tpu.memory_space<vmem>>, %arg4: memref<8x256xf32, #tpu.memory_space<vmem>>, %arg5: memref<1x256xf32, #tpu.memory_space<vmem>>, %arg6: memref<256x256xf32, #tpu.memory_space<vmem>>, %arg7: memref<1x256xf32, #tpu.memory_space<vmem>>, %arg8: memref<1x256xf32, #tpu.memory_space<vmem>>, %arg9: memref<1x1xf32, #tpu.memory_space<smem>>, %arg10: memref<1x8xf32, #tpu.memory_space<vmem>>) attributes {dimension_semantics = [#tpu.dimension_semantics<parallel>], iteration_bounds = array<i64: 1>, scalar_prefetch = 0 : i64, scratch_operands = 0 : i64, tpu.core_type = #tpu.core_type<tc>, window_params = [{transform_indices = @transform_0, window_bounds = array<i64: 8, 16>}, {transform_indices = @transform_1, window_bounds = array<i64: 8, 8>}, {pipeline_mode = #tpu.pipeline_mode<synchronous>, transform_indices = @transform_2, window_bounds = array<i64: 16, 256>}, {pipeline_mode = #tpu.pipeline_mode<synchronous>, transform_indices = @transform_3, window_bounds = array<i64: 8, 256>}, {pipeline_mode = #tpu.pipeline_mode<synchronous>, transform_indices = @transform_4, window_bounds = array<i64: 1, 256>}, {pipeline_mode = #tpu.pipeline_mode<synchronous>, transform_indices = @transform_5, window_bounds = array<i64: 256, 256>}, {pipeline_mode = #tpu.pipeline_mode<synchronous>, transform_indices = @transform_6, window_bounds = array<i64: 1, 256>}, {pipeline_mode = #tpu.pipeline_mode<synchronous>, transform_indices = @transform_7, window_bounds = array<i64: 1, 256>}, {transform_indices = @transform_8, window_bounds = array<i64: 1, 1>}, {transform_indices = @transform_9, window_bounds = array<i64: 1, 8>}]} {
    %c0 = arith.constant 0 : index
    %c0_0 = arith.constant 0 : index
    %0 = vector.load %arg1[%c0, %c0_0] : memref<8x16xf32, #tpu.memory_space<vmem>>, vector<8x16xf32>
    %c0_1 = arith.constant 0 : index
    %c0_2 = arith.constant 0 : index
    %1 = vector.load %arg3[%c0_1, %c0_2] : memref<16x256xf32, #tpu.memory_space<vmem>>, vector<16x256xf32>
    %cst = arith.constant dense<0.000000e+00> : vector<8x256xf32>
    %2 = tpu.matmul %0, %1, %cst {dimension_numbers = #tpu.dot_dimension_numbers<[1], [0], [0], [1], [0, 0, 1, 1], [], []>} : vector<8x16xf32>, vector<16x256xf32>, vector<8x256xf32> -> vector<8x256xf32>
    %c0_3 = arith.constant 0 : index
    %c0_4 = arith.constant 0 : index
    %3 = vector.load %arg2[%c0_3, %c0_4] : memref<8x8xf32, #tpu.memory_space<vmem>>, vector<8x8xf32>
    %c0_5 = arith.constant 0 : index
    %c0_6 = arith.constant 0 : index
    %4 = vector.load %arg4[%c0_5, %c0_6] : memref<8x256xf32, #tpu.memory_space<vmem>>, vector<8x256xf32>
    %cst_7 = arith.constant dense<0.000000e+00> : vector<8x256xf32>
    %5 = tpu.matmul %3, %4, %cst_7 {dimension_numbers = #tpu.dot_dimension_numbers<[1], [0], [0], [1], [0, 0, 1, 1], [], []>} : vector<8x8xf32>, vector<8x256xf32>, vector<8x256xf32> -> vector<8x256xf32>
    %6 = arith.addf %2, %5 : vector<8x256xf32>
    %c0_8 = arith.constant 0 : index
    %c0_9 = arith.constant 0 : index
    %7 = vector.load %arg5[%c0_8, %c0_9] : memref<1x256xf32, #tpu.memory_space<vmem>>, vector<1x256xf32>
    %8 = vector.broadcast %7 : vector<1x256xf32> to vector<8x256xf32>
    %9 = arith.addf %6, %8 : vector<8x256xf32>
    %cst_10 = arith.constant 0.000000e+00 : f32
    %10 = vector.broadcast %cst_10 : f32 to vector<8x256xf32>
    %11 = arith.maximumf %9, %10 : vector<8x256xf32>
    %c0_11 = arith.constant 0 : index
    %c0_12 = arith.constant 0 : index
    %12 = vector.load %arg6[%c0_11, %c0_12] : memref<256x256xf32, #tpu.memory_space<vmem>>, vector<256x256xf32>
    %cst_13 = arith.constant dense<0.000000e+00> : vector<8x256xf32>
    %13 = tpu.matmul %11, %12, %cst_13 {dimension_numbers = #tpu.dot_dimension_numbers<[1], [0], [0], [1], [0, 0, 1, 1], [], []>} : vector<8x256xf32>, vector<256x256xf32>, vector<8x256xf32> -> vector<8x256xf32>
    %c0_14 = arith.constant 0 : index
    %c0_15 = arith.constant 0 : index
    %14 = vector.load %arg7[%c0_14, %c0_15] : memref<1x256xf32, #tpu.memory_space<vmem>>, vector<1x256xf32>
    %15 = vector.broadcast %14 : vector<1x256xf32> to vector<8x256xf32>
    %16 = arith.addf %13, %15 : vector<8x256xf32>
    %cst_16 = arith.constant 0.000000e+00 : f32
    %17 = vector.broadcast %cst_16 : f32 to vector<8x256xf32>
    %18 = arith.maximumf %16, %17 : vector<8x256xf32>
    %c0_17 = arith.constant 0 : index
    %c0_18 = arith.constant 0 : index
    %19 = vector.load %arg8[%c0_17, %c0_18] : memref<1x256xf32, #tpu.memory_space<vmem>>, vector<1x256xf32>
    %20 = tpu.transpose %18, [1, 0] : vector<8x256xf32> -> vector<256x8xf32>
    %cst_19 = arith.constant dense<0.000000e+00> : vector<1x8xf32>
    %21 = tpu.matmul %19, %20, %cst_19 {dimension_numbers = #tpu.dot_dimension_numbers<[1], [0], [0], [1], [0, 0, 1, 1], [], []>} : vector<1x256xf32>, vector<256x8xf32>, vector<1x8xf32> -> vector<1x8xf32>
    %c0_20 = arith.constant 0 : index
    %c0_21 = arith.constant 0 : index
    %22 = memref.load %arg9[%c0_20, %c0_21] : memref<1x1xf32, #tpu.memory_space<smem>>
    %23 = vector.broadcast %22 : f32 to vector<1x8xf32>
    %24 = arith.addf %21, %23 : vector<1x8xf32>
    %c0_22 = arith.constant 0 : index
    %c0_23 = arith.constant 0 : index
    %25 = vector.load %arg10[%c0_22, %c0_23] : memref<1x8xf32, #tpu.memory_space<vmem>>, vector<1x8xf32>
    tpu.vector_store %arg10[%c0_22, %c0_23], %24 {strides = array<i32>} : memref<1x8xf32, #tpu.memory_space<vmem>>, vector<1x8xf32>,
    return
  }
  func.func @transform_0(%arg0: i32) -> (i32, i32) {
    %c0_i32 = arith.constant 0 : i32
    %c0_i32_0 = arith.constant 0 : i32
    return %arg0, %c0_i32 : i32, i32
  }
  func.func @transform_1(%arg0: i32) -> (i32, i32) {
    %c0_i32 = arith.constant 0 : i32
    %c0_i32_0 = arith.constant 0 : i32
    return %arg0, %c0_i32 : i32, i32
  }
  func.func @transform_2(%arg0: i32) -> (i32, i32) {
    %c0_i32 = arith.constant 0 : i32
    %c0_i32_0 = arith.constant 0 : i32
    %c0_i32_1 = arith.constant 0 : i32
    return %c0_i32, %c0_i32_0 : i32, i32
  }
  func.func @transform_3(%arg0: i32) -> (i32, i32) {
    %c0_i32 = arith.constant 0 : i32
    %c0_i32_0 = arith.constant 0 : i32
    %c0_i32_1 = arith.constant 0 : i32
    return %c0_i32, %c0_i32_0 : i32, i32
  }
  func.func @transform_4(%arg0: i32) -> (i32, i32) {
    %c0_i32 = arith.constant 0 : i32
    %c0_i32_0 = arith.constant 0 : i32
    %c0_i32_1 = arith.constant 0 : i32
    return %c0_i32, %c0_i32_0 : i32, i32
  }
  func.func @transform_5(%arg0: i32) -> (i32, i32) {
    %c0_i32 = arith.constant 0 : i32
    %c0_i32_0 = arith.constant 0 : i32
    %c0_i32_1 = arith.constant 0 : i32
    return %c0_i32, %c0_i32_0 : i32, i32
  }
  func.func @transform_6(%arg0: i32) -> (i32, i32) {
    %c0_i32 = arith.constant 0 : i32
    %c0_i32_0 = arith.constant 0 : i32
    %c0_i32_1 = arith.constant 0 : i32
    return %c0_i32, %c0_i32_0 : i32, i32
  }
  func.func @transform_7(%arg0: i32) -> (i32, i32) {
    %c0_i32 = arith.constant 0 : i32
    %c0_i32_0 = arith.constant 0 : i32
    %c0_i32_1 = arith.constant 0 : i32
    return %c0_i32, %c0_i32_0 : i32, i32
  }
  func.func @transform_8(%arg0: i32) -> (i32, i32) {
    %c0_i32 = arith.constant 0 : i32
    %c0_i32_0 = arith.constant 0 : i32
    %c0_i32_1 = arith.constant 0 : i32
    return %c0_i32, %c0_i32_0 : i32, i32
  }
  func.func @transform_9(%arg0: i32) -> (i32, i32) {
    %c0_i32 = arith.constant 0 : i32
    %c0_i32_0 = arith.constant 0 : i32
    return %c0_i32, %arg0 : i32, i32
  }
}

</mosaic_0001>

<bundles_post_ra>
// kernel: qnetwork_forward.1
= control target key start
LH: loop header
LB: loop body
LE: loop exit
PB: predicated region body
PF: predicated region fallthrough
CT: control target
= control target key end

     0   :  { %15 = vsyncpa [#allocation4], 0  ;;  %s712_s0 = inlined_call_operand.vmem [shape: f32[8,16], index: 0, kind: input, shape index: {}]   ;;  %s713_s1 = inlined_call_operand.vmem [shape: f32[8,8], index: 1, kind: input, shape index: {}]   ;;  %s714_s2 = inlined_call_operand.vmem [shape: f32[16,256], index: 2, kind: input, shape index: {}]   ;;  %s715_s3 = inlined_call_operand.vmem [shape: f32[8,256], index: 3, kind: input, shape index: {}]   ;;  %s716_s4 = inlined_call_operand.vmem [shape: f32[1,256], index: 4, kind: input, shape index: {}]   ;;  %s717_s5 = inlined_call_operand.hbm [shape: f32[256,256], index: 5, kind: input, shape index: {}]   ;;  %s718_s6 = inlined_call_operand.vmem [shape: f32[1,256], index: 6, kind: input, shape index: {}]   ;;  %s719_s7 = inlined_call_operand.vmem [shape: f32[1,256], index: 7, kind: input, shape index: {}]   ;;  %s720_s8 = inlined_call_operand.<no memory space> [shape: f32[1,1], index: 8, kind: input, shape index: {}]   ;;  %s721_s9 = inlined_call_operand.hbm [shape: f32[1,8], index: 9, kind: output, shape index: {}]  }
   0x1   :  { %16 = vsyncpa [#allocation5], 0  ;;  %s597_s30 = smov [#allocation3]   ;;  %s549_s13 = scalar_lea.hbm %s717_s5, 8192 }
   0x2   :  { %s32_s10 = sshll.u32 %s597_s30, 4  ;;  %p550_p0 = scmp.ne.s32.totalorder %s717_s5, %s549_s13  ;;  %s33_s10 = int_to_ptr.vmem [resolvable:$true] %s32_s10 }
   0x3   :  { %p553_p1 = scmp.lt.u32.totalorder %s549_s13, %s717_s5 }
   0x5   :  { %p555_p2 = pnand %p553_p1, %p550_p0 }
   0x7   :  { %558 = shalt.err (!%p555_p2)
}
   0x8   :  { %s559_s18 = scalar_lea.vmem %s33_s10, 8192  ;;  %p564_p4 = scmp.lt.s32.totalorder %s33_s10, %s33_s10 }
   0x9   :  { %p560_p3 = scmp.ne.s32.totalorder %s33_s10, %s559_s18  ;;  %p565_p5 = scmp.lt.s32.totalorder %s559_s18, %s559_s18 }
   0xb   :  { %p566_p6 = por %p565_p5, %p564_p4 }
   0xd   :  { %p567_p7 = pnand %p566_p6, %p560_p3 }
   0xf   :  { %570 = shalt.err (!%p567_p7)
}
  0x10   :  { %s598_s19 = smov 256   ;;  %s599_s20 = smov 16  }
  0x11   :  { %38 = dma.hbm_to_vmem [thread:$0]  %s717_s5, 8192, %s33_s10, [#allocation4], %s598_s19, %s598_s19, %s599_s20  }
  0x12   :  { %593 = dma.done.wait [#allocation4], 8192  }
  0x13   :  { %594 = vsyncadd [#allocation4], 4294959104  ;;  %v600_v0 = vmov 0.0   ;;  %v55_v1 = vld [vmem:[%s715_s3 + $0x8] sm:$0xff]  ;;  %v54_v2 = vld [vmem:[%s715_s3] sm:$0xff]  ;;  %vm56_vm0 = vcmask 64512  }
  0x14   :  { %124 = vmatprep.mubr.f32.mxu0 %v600_v0  ;;  %v53_v3 = vld [vmem:[%s713_s1] sm:$0xff]  ;;  %60 = vmatprep.subr.mxu0 %v55_v1  ;;  %v50_v4 = vld [vmem:[%s714_s2 + $0x8] sm:$0xff]  ;;  %v52_v5 = vld [vmem:[%s714_s2 + $0x18] sm:$0xff]  ;;  %vm131_vm1 = vcmask 130048   ;;  %s601_s19 = smov [#allocation6]   ;;  %vm455_vm2 = vcmask 57344  }
  0x15   :  { %v49_v6 = vld [vmem:[%s714_s2] sm:$0xff]  ;;  %61 = vmatpush1.msra.mxu0 %v54_v2  ;;  %v474_v7 = vpack.c.bf16 %v52_v5, %v50_v4  ;;  %v51_v8 = vld [vmem:[%s714_s2 + $0x10] sm:$0xff]  ;;  %v223_v9 = vld [vmem:[#allocation3 + $0x8] sm:$0xff]  ;;  %s463_s20 = sshll.u32 %s601_s19, 4  ;;  %s464_s20 = int_to_ptr.vmem [resolvable:$true] %s463_s20 }
  0x16   :  { %472 = vmatmul.mubr.msk.f32.vlgmr.msra.gmra.mrb[0].mxu0 %vm56_vm0, %v53_v3  ;;  %v476_v10 = vpack.c.bf16 %v51_v8, %v49_v6  ;;  %v225_v11 = vld [vmem:[#allocation3 + $0x18] sm:$0xff]  ;;  %v222_v12 = vld [vmem:[#allocation3] sm:$0xff]  ;;  %v224_v13 = vld [vmem:[#allocation3 + $0x10] sm:$0xff]  ;;  %s575_s21 = scalar_lea.vmem %s464_s20, 32  ;;  %p576_p9 = scmp.lt.s32.totalorder %s464_s20, %s464_s20 }
  0x17   :  { %475 = vmatprep.subr.bf16.mxu0 %v474_v7  ;;  %199 = vmatprep.mubr.f32.mxu0 %v600_v0  ;;  %v478_v14 = vpack.c.bf16 %v225_v11, %v223_v9  ;;  %v480_v15 = vpack.c.bf16 %v224_v13, %v222_v12  ;;  %v227_v16 = vld [vmem:[#allocation3 + $0x28] sm:$0xff]  ;;  %v229_v17 = vld [vmem:[#allocation3 + $0x38] sm:$0xff]  ;;  %v226_v18 = vld [vmem:[#allocation3 + $0x20] sm:$0xff] }
  0x18   :  { %477 = vmatpush1.bf16.msra.mxu0 %v476_v10  ;;  %v482_v19 = vpack.c.bf16 %v229_v17, %v227_v16  ;;  %v228_v20 = vld [vmem:[#allocation3 + $0x30] sm:$0xff]  ;;  %v231_v21 = vld [vmem:[#allocation3 + $0x48] sm:$0xff]  ;;  %v233_v22 = vld [vmem:[#allocation3 + $0x58] sm:$0xff] }
  0x19   :  { %479 = vmatprep.subr.bf16.mxu1 %v478_v14  ;;  %v484_v23 = vpack.c.bf16 %v228_v20, %v226_v18  ;;  %v48_v24 = vld [vmem:[%s712_s0] sm:$0xff]  ;;  %v486_v25 = vpack.c.bf16 %v233_v22, %v231_v21  ;;  %v232_v27 = vld [vmem:[#allocation3 + $0x50] sm:$0xff]  ;;  %v235_v28 = vld [vmem:[#allocation3 + $0x68] sm:$0xff] }
  0x1a   :  { %481 = vmatpush1.bf16.msra.mxu1 %v480_v15  ;;  %v230_v26 = vld [vmem:[#allocation3 + $0x40] sm:$0xff]  ;;  %v237_v29 = vld [vmem:[#allocation3 + $0x78] sm:$0xff]  ;;  %v236_v33 = vld [vmem:[#allocation3 + $0x70] sm:$0xff] }
  0x1b   :  { %483 = vmatprep.subr.bf16.mxu1 %v482_v19  ;;  %v488_v30 = vpack.c.bf16 %v232_v27, %v230_v26  ;;  %v490_v31 = vpack.c.bf16 %v237_v29, %v235_v28  ;;  %v234_v32 = vld [vmem:[#allocation3 + $0x60] sm:$0xff]  ;;  %v239_v34 = vld [vmem:[#allocation3 + $0x88] sm:$0xff]  ;;  %v241_v35 = vld [vmem:[#allocation3 + $0x98] sm:$0xff] }
  0x1c   :  { %v492_v36 = vpack.c.bf16 %v236_v33, %v234_v32  ;;  %v494_v37 = vpack.c.bf16 %v241_v35, %v239_v34  ;;  %v238_v38 = vld [vmem:[#allocation3 + $0x80] sm:$0xff]  ;;  %v240_v39 = vld [vmem:[#allocation3 + $0x90] sm:$0xff]  ;;  %v243_v40 = vld [vmem:[#allocation3 + $0xa8] sm:$0xff] }
  0x1d   :  { %v245_v41 = vld [vmem:[#allocation3 + $0xb8] sm:$0xff]  ;;  %v496_v42 = vpack.c.bf16 %v240_v39, %v238_v38  ;;  %v242_v44 = vld [vmem:[#allocation3 + $0xa0] sm:$0xff]  ;;  %v244_v45 = vld [vmem:[#allocation3 + $0xb0] sm:$0xff] }
  0x1e   :  { %473 = vmatmul.mubr.msk.f32.vlgmr.msra.gmra.mrb[0].mxu0 %vm131_vm1, %v48_v24  ;;  %485 = vmatpush1.bf16.msra.mxu1 %v484_v23  ;;  %v498_v43 = vpack.c.bf16 %v245_v41, %v243_v40  ;;  %v247_v46 = vld [vmem:[#allocation3 + $0xc8] sm:$0xff]  ;;  %v249_v47 = vld [vmem:[#allocation3 + $0xd8] sm:$0xff]  ;;  %v500_v48 = vpack.c.bf16 %v244_v45, %v242_v44  ;;  %v246_v50 = vld [vmem:[#allocation3 + $0xc0] sm:$0xff] }
  0x1f   :  { %487 = vmatprep.subr.bf16.mxu1 %v486_v25  ;;  %v502_v49 = vpack.c.bf16 %v249_v47, %v247_v46  ;;  %v248_v51 = vld [vmem:[#allocation3 + $0xd0] sm:$0xff]  ;;  %v251_v52 = vld [vmem:[#allocation3 + $0xe8] sm:$0xff]  ;;  %v253_v53 = vld [vmem:[#allocation3 + $0xf8] sm:$0xff] }
  0x20   :  { %v504_v54 = vpack.c.bf16 %v248_v51, %v246_v50  ;;  %v506_v55 = vpack.c.bf16 %v253_v53, %v251_v52  ;;  %v250_v56 = vld [vmem:[#allocation3 + $0xe0] sm:$0xff]  ;;  %v252_v57 = vld [vmem:[#allocation3 + $0xf0] sm:$0xff]  ;;  %v255_v58 = vld [vmem:[#allocation3 + $0x108] sm:$0xff] }
  0x21   :  { %v257_v59 = vld [vmem:[#allocation3 + $0x118] sm:$0xff]  ;;  %v508_v60 = vpack.c.bf16 %v252_v57, %v250_v56  ;;  %v254_v62 = vld [vmem:[#allocation3 + $0x100] sm:$0xff]  ;;  %v256_v63 = vld [vmem:[#allocation3 + $0x110] sm:$0xff] }
  0x22   :  { %489 = vmatpush1.bf16.msra.mxu1 %v488_v30  ;;  %v510_v61 = vpack.c.bf16 %v257_v59, %v255_v58  ;;  %v259_v0 = vld [vmem:[#allocation3 + $0x128] sm:$0xff]  ;;  %v261_v1 = vld [vmem:[#allocation3 + $0x138] sm:$0xff]  ;;  %v512_v2 = vpack.c.bf16 %v256_v63, %v254_v62  ;;  %v258_v4 = vld [vmem:[#allocation3 + $0x120] sm:$0xff] }
  0x23   :  { %491 = vmatprep.subr.bf16.mxu1 %v490_v31  ;;  %v514_v3 = vpack.c.bf16 %v261_v1, %v259_v0  ;;  %v260_v5 = vld [vmem:[#allocation3 + $0x130] sm:$0xff]  ;;  %v263_v6 = vld [vmem:[#allocation3 + $0x148] sm:$0xff]  ;;  %v265_v7 = vld [vmem:[#allocation3 + $0x158] sm:$0xff] }
  0x24   :  { %v516_v8 = vpack.c.bf16 %v260_v5, %v258_v4  ;;  %v518_v9 = vpack.c.bf16 %v265_v7, %v263_v6  ;;  %v262_v10 = vld [vmem:[#allocation3 + $0x140] sm:$0xff]  ;;  %v264_v11 = vld [vmem:[#allocation3 + $0x150] sm:$0xff]  ;;  %v267_v12 = vld [vmem:[#allocation3 + $0x168] sm:$0xff]  ;;  %v373_v4 = vstv %s720_s8 }
  0x25   :  { %v269_v13 = vld [vmem:[#allocation3 + $0x178] sm:$0xff]  ;;  %v520_v14 = vpack.c.bf16 %v264_v11, %v262_v10  ;;  %v266_v16 = vld [vmem:[#allocation3 + $0x160] sm:$0xff]  ;;  %v268_v17 = vld [vmem:[#allocation3 + $0x170] sm:$0xff] }
  0x26   :  { %493 = vmatpush1.bf16.msra.mxu1 %v492_v36  ;;  %v522_v15 = vpack.c.bf16 %v269_v13, %v267_v12  ;;  %v271_v18 = vld [vmem:[#allocation3 + $0x188] sm:$0xff]  ;;  %v273_v19 = vld [vmem:[#allocation3 + $0x198] sm:$0xff]  ;;  %v524_v20 = vpack.c.bf16 %v268_v17, %v266_v16  ;;  %v270_v22 = vld [vmem:[#allocation3 + $0x180] sm:$0xff] }
  0x27   :  { %495 = vmatprep.subr.bf16.mxu1 %v494_v37  ;;  %v526_v21 = vpack.c.bf16 %v273_v19, %v271_v18  ;;  %v272_v23 = vld [vmem:[#allocation3 + $0x190] sm:$0xff]  ;;  %v275_v24 = vld [vmem:[#allocation3 + $0x1a8] sm:$0xff]  ;;  %v277_v25 = vld [vmem:[#allocation3 + $0x1b8] sm:$0xff] }
  0x28   :  { %v528_v26 = vpack.c.bf16 %v272_v23, %v270_v22  ;;  %v530_v27 = vpack.c.bf16 %v277_v25, %v275_v24  ;;  %v274_v28 = vld [vmem:[#allocation3 + $0x1a0] sm:$0xff]  ;;  %v276_v29 = vld [vmem:[#allocation3 + $0x1b0] sm:$0xff]  ;;  %v279_v30 = vld [vmem:[#allocation3 + $0x1c8] sm:$0xff] }
  0x29   :  { %v281_v31 = vld [vmem:[#allocation3 + $0x1d8] sm:$0xff]  ;;  %v532_v32 = vpack.c.bf16 %v276_v29, %v274_v28  ;;  %v278_v34 = vld [vmem:[#allocation3 + $0x1c0] sm:$0xff]  ;;  %v280_v35 = vld [vmem:[#allocation3 + $0x1d0] sm:$0xff] }
  0x2a   :  { %497 = vmatpush1.bf16.msra.mxu1 %v496_v42  ;;  %v534_v33 = vpack.c.bf16 %v281_v31, %v279_v30  ;;  %v536_v36 = vpack.c.bf16 %v280_v35, %v278_v34  ;;  %v283_v37 = vld [vmem:[#allocation3 + $0x1e8] sm:$0xff]  ;;  %v285_v38 = vld [vmem:[#allocation3 + $0x1f8] sm:$0xff]  ;;  %v282_v40 = vld [vmem:[#allocation3 + $0x1e0] sm:$0xff] }
  0x2b   :  { %499 = vmatprep.subr.bf16.mxu1 %v498_v43  ;;  %v538_v39 = vpack.c.bf16 %v285_v38, %v283_v37  ;;  %v284_v41 = vld [vmem:[#allocation3 + $0x1f0] sm:$0xff]  ;;  %v208_v43 = vlaneseq  ;;  %v206_v46 = vld [vmem:[%s716_s4] sm:$0x3] }
  0x2c   :  { %v540_v42 = vpack.c.bf16 %v284_v41, %v282_v40  ;;  %v371_v56 = vld [vmem:[%s719_s7] sm:$0x3] }
  0x2d   :  { %v209_v44 = vshrl.u32 %v208_v43, 7  ;;  %v286_v58 = vld [vmem:[%s718_s6] sm:$0x3]  ;;  %s571_s6 = scalar_lea.vmem %s464_s20, 16 }
  0x2e   :  { %501 = vmatpush1.bf16.msra.mxu1 %v500_v48  ;;  %p572_p8 = scmp.ne.s32.totalorder %s464_s20, %s571_s6  ;;  %p577_p10 = scmp.lt.s32.totalorder %s575_s21, %s571_s6 }
  0x2f   :  { %503 = vmatprep.subr.bf16.mxu1 %v502_v49  ;;  %v210_v45 = vsub.s32 0, %v209_v44  ;;  %v214_v47 = vsub.s32 1, %v209_v44 }
  0x30   :  { %p578_p11 = por %p577_p10, %p576_p9 }
  0x31   :  { %v211_v48 = vrot.slane %v206_v46, %v210_v45  ;;  %v215_v49 = vrot.slane %v206_v46, %v214_v47  ;;  %v382_v57 = vrot.slane %v371_v56, %v214_v47  ;;  %v291_v59 = vrot.slane %v286_v58, %v210_v45 }
  0x32   :  { %505 = vmatpush1.bf16.msra.mxu1 %v504_v54  ;;  %p579_p12 = pnand %p578_p11, %p572_p8 }
  0x33   :  { %507 = vmatprep.subr.bf16.mxu1 %v506_v55  ;;  %449 = vmatprep.mubr.f32.mxu0 %v382_v57 }
  0x36   :  { %509 = vmatpush1.bf16.msra.mxu1 %v508_v60  ;;  %v295_v60 = vrot.slane %v286_v58, %v214_v47 }
  0x37   :  { %511 = vmatprep.subr.bf16.mxu1 %v510_v61 }
  0x3a   :  { %513 = vmatpush1.bf16.msra.mxu1 %v512_v2 }
  0x3b   :  { %515 = vmatprep.subr.bf16.mxu1 %v514_v3  ;;  %v378_v3 = vrot.slane %v371_v56, %v210_v45 }
  0x3e   :  { %517 = vmatpush1.bf16.msra.mxu1 %v516_v8 }
  0x3f   :  { %519 = vmatprep.subr.bf16.mxu1 %v518_v9 }
  0x42   :  { %521 = vmatpush1.bf16.msra.mxu1 %v520_v14 }
  0x43   :  { %523 = vmatprep.subr.bf16.mxu1 %v522_v15 }
  0x46   :  { %525 = vmatpush1.bf16.msra.mxu1 %v524_v20 }
  0x47   :  { %527 = vmatprep.subr.bf16.mxu1 %v526_v21 }
  0x4a   :  { %529 = vmatpush1.bf16.msra.mxu1 %v528_v26 }
  0x4b   :  { %531 = vmatprep.subr.bf16.mxu1 %v530_v27 }
  0x4e   :  { %533 = vmatpush1.bf16.msra.mxu1 %v532_v32 }
  0x4f   :  { %535 = vmatprep.subr.bf16.mxu1 %v534_v33 }
  0x52   :  { %537 = vmatpush1.bf16.msra.mxu1 %v536_v36 }
  0x53   :  { %539 = vmatprep.subr.bf16.mxu1 %v538_v39 }
  0x56   :  { %541 = vmatpush1.bf16.msra.mxu1 %v540_v42 }
  0xf1   :  { %v201_v50 = vpop.f32.mrb[0].mxu0 }
  0xf2   :  { %v218_v51 = vadd.f32 %v211_v48, %v201_v50  ;;  %v203_v52 = vpop.f32.mrb[1].mxu0 }
  0xf3   :  { %v219_v53 = vadd.f32 %v215_v49, %v203_v52 }
  0xf4   :  { %v220_v55 = vmax.f32 %v218_v51, 0.0 }
  0xf5   :  { %v221_v54 = vmax.f32 %v219_v53, 0.0 }
  0xf7   :  { %362 = vmatprep.mubr.f32.mxu1 %v221_v54 }
  0xf8   :  { %363 = vmatmul.mubr.f32.vlgmr.msra.gmra.mrb[0].mxu1 %v220_v55 }
 0x1cb   :  { %v364_v61 = vpop.f32.mrb[0].mxu1 }
 0x1cc   :  { %v365_v62 = vadd.f32 %v364_v61, %v291_v59  ;;  %v366_v63 = vpop.f32.mrb[1].mxu1 }
 0x1cd   :  { %v367_v0 = vadd.f32 %v366_v63, %v295_v60 }
 0x1ce   :  { %v369_v2 = vmax.f32 %v365_v62, 0.0 }
 0x1cf   :  { %v370_v1 = vmax.f32 %v367_v0, 0.0 }
 0x1d1   :  { %385 = vmatprep.subr.mxu0 %v370_v1 }
 0x1d2   :  { %386 = vmatpush1.xpose.msra.mxu0 %v369_v2 }
 0x1d5   :  { %450 = vmatmul.mubr.f32.vlgmr.msra.gmra.mrb[2].mxu0 %v378_v3 }
 0x2a8   :  { %v451_v5 = vpop.f32.mrb[2].mxu0 }
 0x2a9   :  { %v452_v6 = vadd.f32 %v451_v5, %v373_v4  ;;  %v453_v7 = vpop.f32.mrb[3].mxu0 }
 0x2ab   :  { %456 = vst.msk [vmem:[#allocation6] sm:$0x1] %vm455_vm2, %v452_v6 }
 0x2ac   :  { %582 = shalt.err (!%p579_p12)
}
 0x2ad   :  { %s583_s8 = scalar_lea.hbm %s721_s9, 16 }
 0x2ae   :  { %p584_p13 = scmp.ne.s32.totalorder %s721_s9, %s583_s8  ;;  %p587_p0 = scmp.lt.u32.totalorder %s583_s8, %s721_s9 }
 0x2b0   :  { %p589_p1 = pnand %p587_p0, %p584_p13 }
 0x2b2   :  { %592 = shalt.err (!%p589_p1)
}
 0x2b3   :  { %466 = dma.vmem_to_hbm [thread:$0]  %s464_s20, 16, %s721_s9, [#allocation5]  }
 0x2b4   :  { %595 = dma.done.wait [#allocation5], 16  }
 0x2b5   :  { %596 = vsyncadd [#allocation5], 4294967280 }
 0x2b6   :  { %470 = vsyncpa [#allocation4], 1 }
 0x2b7   :  { %471 = vsyncpa [#allocation5], 1 }

</bundles_post_ra>
